<compile_context>
chip_gen: v7x
topology: tpu7x:2x2x1
jax: 0.10.0
libtpu: 0.0.40
codegen_flags: <defaults>
</compile_context>

<pallas_src>
import functools
import math

import jax
import jax.numpy as jnp
from jax.experimental import pallas as pl
from jax.experimental.pallas import tpu as pltpu


# ---------------------------------------------------------------------------
# Kernel 1: fused QKV projection.
#   [q | k | v] = x @ [Wq^T * C**-0.5 | Wk^T | Wv^T]
# ---------------------------------------------------------------------------
def qkv_proj_kernel(x_ref, w_ref, q_ref, k_ref, v_ref):
    C = x_ref.shape[-1]
    qkv = jnp.dot(x_ref[...], w_ref[...], preferred_element_type=jnp.float32)  # (tr, 3C)
    # Slice boundaries are multiples of C (vreg-aligned whenever C % 128 == 0).
    q_ref[...] = qkv[:, 0:C].astype(q_ref.dtype)
    k_ref[...] = qkv[:, C:2 * C].astype(k_ref.dtype)
    v_ref[...] = qkv[:, 2 * C:3 * C].astype(v_ref.dtype)


# ---------------------------------------------------------------------------
# Kernel 2: flash-style causal attention over KV tiles + fused output projection.
# grid = (B, num_q_tiles, num_kv_tiles); kv is the innermost reduction axis.
# ---------------------------------------------------------------------------
def flash_mha_kernel(q_ref, k_ref, v_ref, wpt_ref, bp_ref, o_ref,
                     m_scr, l_scr, acc_scr, *, num_heads, head_size):
    qi = pl.program_id(1)
    kv = pl.program_id(2)
    tq, C = q_ref.shape
    tk = k_ref.shape[0]
    in_dtype = q_ref.dtype

    # Last KV tile that intersects the causal region of this query tile.
    last_needed = (qi * tq + tq - 1) // tk

    @pl.when(kv == 0)
    def _init():
        m_scr[...] = jnp.full_like(m_scr, -jnp.inf)
        l_scr[...] = jnp.zeros_like(l_scr)
        acc_scr[...] = jnp.zeros_like(acc_scr)

    @pl.when(kv <= last_needed)          # causal block skipping
    def _accumulate():
        q = q_ref[...]                   # (tq, C)  scale already folded into Wq
        k = k_ref[...]                   # (tk, C)
        v = v_ref[...]                   # (tk, C)

        row = qi * tq + jax.lax.broadcasted_iota(jnp.int32, (tq, tk), 0)
        col = kv * tk + jax.lax.broadcasted_iota(jnp.int32, (tq, tk), 1)
        causal = row >= col              # kv==0 always keeps >=1 column per row -> no NaNs

        # TODO(synk): per-head lane slices (head_size typically 64) are not vreg-aligned;
        # a head-major 128-padded staging layout would remove the relayouts if they show
        # up on the critical path in the bundle dump.
        for h in range(num_heads):       # static unroll over heads
            lo = h * head_size
            hi = lo + head_size

            # Scores: contract over the head dim directly (no in-kernel transpose of k).
            s = jax.lax.dot_general(q[:, lo:hi], k[:, lo:hi], (((1,), (1,)), ((), ())),
                                    preferred_element_type=jnp.float32)      # (tq, tk)
            s = jnp.where(causal, s, -jnp.inf)

            m_prev = m_scr[:, h:h + 1]                                        # (tq, 1)
            m_new = jnp.maximum(m_prev, jnp.max(s, axis=-1, keepdims=True))
            alpha = jnp.exp(m_prev - m_new)                                   # (tq, 1)
            p = jnp.exp(s - m_new)                                            # (tq, tk) f32

            l_scr[:, h:h + 1] = alpha * l_scr[:, h:h + 1] + jnp.sum(p, axis=-1, keepdims=True)
            acc_scr[:, lo:hi] = alpha * acc_scr[:, lo:hi] + jnp.dot(
                p.astype(in_dtype), v[:, lo:hi], preferred_element_type=jnp.float32)
            m_scr[:, h:h + 1] = m_new

    @pl.when(kv == last_needed)          # finalize on the last KV tile this q tile needs
    def _finalize():
        # Normalize each head's accumulator in place (exact divide; finalize-only cost).
        for h in range(num_heads):
            lo = h * head_size
            acc_scr[:, lo:lo + head_size] = (
                acc_scr[:, lo:lo + head_size] / l_scr[:, h:h + 1])
        concat = acc_scr[...].astype(in_dtype)                                # (tq, C)
        out = jnp.dot(concat, wpt_ref[...], preferred_element_type=jnp.float32)
        out = out + bp_ref[...].astype(jnp.float32)
        o_ref[...] = out.astype(o_ref.dtype)


def multi_head_attention(x, wq, wk, wv, w_proj, b_proj, *, num_heads, head_size,
                         q_block_size=256, kv_block_size=256, proj_block_size=512,
                         vmem_limit_bytes=None, single_buffer_constants=None):
    """x: (B, T, C); wq/wk/wv: (num_heads, head_size, C) [nn.Linear weight layout];
    w_proj: (C, C); b_proj: (C,).  Eval-mode forward of the PyTorch module.

    Tile guidance: 256 is a safe default everywhere; on v6e (128 MiB VMEM) q/kv blocks
    of 512 amortize the per-grid-step overhead better; on v7x (64 MiB physical VMEM)
    keep 256 and check the computed VMEM budget below.
    """
    B, T, C = x.shape
    assert num_heads * head_size == C
    dtype = x.dtype

    # ---- one-time host-side weight prep --------------------------------------
    def fuse(w):  # (H, hs, C) -> (C, H*hs): pre-transposed, per-head contiguous columns
        return jnp.transpose(w, (2, 0, 1)).reshape(C, num_heads * head_size)

    # Fold the reference's `* C ** (-0.5)` (n_embd, NOT head_size — intentional) into Wq.
    w_qkv = jnp.concatenate([fuse(wq) * (C ** -0.5), fuse(wk), fuse(wv)],
                            axis=1).astype(dtype)                       # (C, 3C)
    wp_t = jnp.transpose(w_proj).astype(dtype)                          # (C, C)
    b2 = b_proj.reshape(1, C).astype(dtype)

    # ---- tile sizes -----------------------------------------------------------
    tq = min(q_block_size, T)
    tk = min(kv_block_size, T)
    tr = min(proj_block_size, T)
    assert T % tq == 0 and T % tk == 0 and T % tr == 0, "T must divide the tile sizes"
    num_q, num_kv, num_r = T // tq, T // tk, T // tr

    # ---- VMEM budget: derived from the actual live buffers (do NOT rely on the
    # per-generation scoped default; v7x has only 64 MiB physical VMEM). --------
    if vmem_limit_bytes is None:
        itm = dtype.itemsize
        attn_live = (2 * tq * C * itm                     # Q block (double-buffered)
                     + 2 * 2 * tk * C * itm               # K + V blocks (double-buffered)
                     + 2 * tq * C * itm                   # output block (double-buffered)
                     + (C * C + C) * itm                  # single-buffered Wproj^T + bias
                     + (tq * C + 2 * tq * num_heads) * 4  # f32 acc / m / l scratch
                     + 4 * tq * tk * 4)                   # in-flight f32 score/prob temps
        proj_live = (2 * tr * C * itm                     # x block (double-buffered)
                     + 3 * C * C * itm                    # single-buffered fused QKV weights
                     + 3 * 2 * tr * C * itm               # q/k/v output blocks (double-buffered)
                     + 3 * tr * C * 4)                    # f32 matmul result before the casts
        need = max(attn_live, proj_live)
        # 2x headroom for compiler-internal scratch, 16 MiB floor, stay inside v7x VMEM.
        vmem_limit_bytes = int(min(max(2 * need, 16 * 1024 * 1024), 48 * 1024 * 1024))

    def run(single_buf_consts):
        def const_spec(shape, index_map):
            # Grid-constant operands: never re-DMAed (constant index_map); single-buffer
            # them so they don't pay the default 2x VMEM allocation.
            if single_buf_consts:
                return pl.BlockSpec(shape, index_map, pipeline_mode=pl.Buffered(1))
            return pl.BlockSpec(shape, index_map)

        # --- kernel 1: QKV projection, once per sequence row (not per query tile) ---
        q, k, v = pl.pallas_call(
            qkv_proj_kernel,
            out_shape=(jax.ShapeDtypeStruct((B, T, C), dtype),) * 3,
            grid_spec=pltpu.PrefetchScalarGridSpec(
                num_scalar_prefetch=0,
                grid=(B, num_r),
                in_specs=[
                    pl.BlockSpec((None, tr, C), lambda b, r: (b, r, 0)),
                    const_spec((C, 3 * C), lambda b, r: (0, 0)),
                ],
                out_specs=tuple(
                    pl.BlockSpec((None, tr, C), lambda b, r: (b, r, 0)) for _ in range(3)),
            ),
            compiler_params=pltpu.CompilerParams(
                dimension_semantics=("parallel", "parallel"),
                vmem_limit_bytes=vmem_limit_bytes,
            ),
        )(x, w_qkv)

        # --- kernel 2: flash attention + fused output projection --------------------
        def q_map(b, qi, kv):
            return (b, qi, 0)

        def kv_map(b, qi, kv):
            # Clamp past-diagonal KV tiles (skipped by pl.when in the kernel) onto the
            # last needed tile: the block index doesn't change -> no extra DMA issued.
            return (b, jnp.minimum(kv, (qi * tq + tq - 1) // tk), 0)

        kernel = functools.partial(flash_mha_kernel, num_heads=num_heads,
                                   head_size=head_size)

        return pl.pallas_call(
            kernel,
            out_shape=jax.ShapeDtypeStruct((B, T, C), dtype),
            grid_spec=pltpu.PrefetchScalarGridSpec(
                num_scalar_prefetch=0,
                grid=(B, num_q, num_kv),
                in_specs=[
                    pl.BlockSpec((None, tq, C), q_map),              # Q tile
                    pl.BlockSpec((None, tk, C), kv_map),             # K tile
                    pl.BlockSpec((None, tk, C), kv_map),             # V tile
                    const_spec((C, C), lambda b, qi, kv: (0, 0)),    # Wproj^T
                    const_spec((1, C), lambda b, qi, kv: (0, 0)),    # proj bias
                ],
                out_specs=pl.BlockSpec((None, tq, C), q_map),
                scratch_shapes=[
                    pltpu.VMEM((tq, num_heads), jnp.float32),   # running max per head
                    pltpu.VMEM((tq, num_heads), jnp.float32),   # running sum per head
                    pltpu.VMEM((tq, C), jnp.float32),           # running head outputs
                ],
            ),
            compiler_params=pltpu.CompilerParams(
                dimension_semantics=("parallel", "parallel", "arbitrary"),
                vmem_limit_bytes=vmem_limit_bytes,
            ),
        )(q, k, v, wp_t, b2)

    if single_buffer_constants is not None:
        return run(single_buffer_constants)
    try:
        return run(True)
    except Exception:
        # pipeline_mode=pl.Buffered(1) unavailable on this jax version: fall back to the
        # default double-buffering for the grid-constant operands (identical results).
        return run(False)


def reference_mha(x, wq, wk, wv, w_proj, b_proj):
    """Plain-JAX reference mirroring the PyTorch forward (dropout = identity)."""
    B, T, C = x.shape
    num_heads = wq.shape[0]
    outs = []
    for h in range(num_heads):
        q = x @ wq[h].T
        k = x @ wk[h].T
        v = x @ wv[h].T
        w = (q @ jnp.swapaxes(k, -2, -1)) * (C ** -0.5)
        mask = jnp.tril(jnp.ones((T, T), dtype=bool))
        w = jnp.where(mask, w, -jnp.inf)
        w = jax.nn.softmax(w, axis=-1)
        outs.append(w @ v)
    cat = jnp.concatenate(outs, axis=-1)
    return cat @ w_proj.T + b_proj


if __name__ == "__main__":
    # Small shapes consistent with the module.
    B, T = 2, 16                # batch, sequence (block_size >= T)
    n_embd = 32
    num_heads = 4
    head_size = n_embd // num_heads

    key = jax.random.PRNGKey(0)
    kx, kq, kk, kv_, kp, kb = jax.random.split(key, 6)

    x = jax.random.normal(kx, (B, T, n_embd), dtype=jnp.float32)

    # Deterministic parameter init (Linear-like fan-in scaling).
    scale_in = 1.0 / math.sqrt(n_embd)
    wq = jax.random.uniform(kq, (num_heads, head_size, n_embd), jnp.float32, -scale_in, scale_in)
    wk = jax.random.uniform(kk, (num_heads, head_size, n_embd), jnp.float32, -scale_in, scale_in)
    wv = jax.random.uniform(kv_, (num_heads, head_size, n_embd), jnp.float32, -scale_in, scale_in)
    w_proj = jax.random.uniform(kp, (n_embd, n_embd), jnp.float32, -scale_in, scale_in)
    b_proj = jax.random.uniform(kb, (n_embd,), jnp.float32, -scale_in, scale_in)

    # Small q/kv blocks so the demo exercises the multi-tile online-softmax path,
    # causal block skipping and the clamped KV index map (attention grid = (2, 2, 2)).
    out = multi_head_attention(
        x, wq, wk, wv, w_proj, b_proj, num_heads=num_heads, head_size=head_size,
        q_block_size=8, kv_block_size=8,
    )
    out = jax.block_until_ready(out)

    ref = reference_mha(x, wq, wk, wv, w_proj, b_proj)
    assert out.shape == (B, T, n_embd)
    assert jnp.allclose(out, ref, atol=1e-4, rtol=1e-4), "Pallas output mismatch vs reference"

    print("KERNEL_OK")
</pallas_src>

<mosaic_0001>
module attributes {stable_mosaic.version = 11 : i64} {
  func.func @qkv_proj_kernel(%arg0: i32, %arg1: i32, %arg2: memref<1x16x32xf32, #tpu.memory_space<vmem>>, %arg3: memref<32x96xf32, #tpu.memory_space<vmem>>, %arg4: memref<1x16x32xf32, #tpu.memory_space<vmem>>, %arg5: memref<1x16x32xf32, #tpu.memory_space<vmem>>, %arg6: memref<1x16x32xf32, #tpu.memory_space<vmem>>) attributes {dimension_semantics = [#tpu.dimension_semantics<parallel>, #tpu.dimension_semantics<parallel>], iteration_bounds = array<i64: 2, 1>, scalar_prefetch = 0 : i64, scratch_operands = 0 : i64, tpu.core_type = #tpu.core_type<tc>, window_params = [{transform_indices = @transform_0, window_bounds = array<i64: 1, 16, 32>}, {pipeline_mode = #tpu.pipeline_mode<synchronous>, transform_indices = @transform_1, window_bounds = array<i64: 32, 96>}, {transform_indices = @transform_2, window_bounds = array<i64: 1, 16, 32>}, {transform_indices = @transform_3, window_bounds = array<i64: 1, 16, 32>}, {transform_indices = @transform_4, window_bounds = array<i64: 1, 16, 32>}]} {
    %c0 = arith.constant 0 : index
    %c0_0 = arith.constant 0 : index
    %c0_1 = arith.constant 0 : index
    %0 = vector.load %arg2[%c0, %c0_0, %c0_1] : memref<1x16x32xf32, #tpu.memory_space<vmem>>, vector<1x16x32xf32>
    %1 = vector.shape_cast %0 : vector<1x16x32xf32> to vector<16x32xf32>
    %c0_2 = arith.constant 0 : index
    %c0_3 = arith.constant 0 : index
    %2 = vector.load %arg3[%c0_2, %c0_3] : memref<32x96xf32, #tpu.memory_space<vmem>>, vector<32x96xf32>
    %cst = arith.constant dense<0.000000e+00> : vector<16x96xf32>
    %3 = tpu.matmul %1, %2, %cst {dimension_numbers = #tpu.dot_dimension_numbers<[1], [0], [0], [1], [0, 0, 1, 1], [], []>} : vector<16x32xf32>, vector<32x96xf32>, vector<16x96xf32> -> vector<16x96xf32>
    %4 = vector.extract_strided_slice %3 {offsets = [0, 0], sizes = [16, 32], strides = [1, 1]} : vector<16x96xf32> to vector<16x32xf32>
    %c0_4 = arith.constant 0 : index
    %c0_5 = arith.constant 0 : index
    %c0_6 = arith.constant 0 : index
    %5 = vector.load %arg4[%c0_4, %c0_5, %c0_6] : memref<1x16x32xf32, #tpu.memory_space<vmem>>, vector<1x16x32xf32>
    %6 = vector.shape_cast %5 : vector<1x16x32xf32> to vector<16x32xf32>
    %7 = vector.shape_cast %4 : vector<16x32xf32> to vector<1x16x32xf32>
    tpu.vector_store %arg4[%c0_4, %c0_5, %c0_6], %7 {strides = array<i32>} : memref<1x16x32xf32, #tpu.memory_space<vmem>>, vector<1x16x32xf32>,
    %8 = vector.extract_strided_slice %3 {offsets = [0, 32], sizes = [16, 32], strides = [1, 1]} : vector<16x96xf32> to vector<16x32xf32>
    %c0_7 = arith.constant 0 : index
    %c0_8 = arith.constant 0 : index
    %c0_9 = arith.constant 0 : index
    %9 = vector.load %arg5[%c0_7, %c0_8, %c0_9] : memref<1x16x32xf32, #tpu.memory_space<vmem>>, vector<1x16x32xf32>
    %10 = vector.shape_cast %9 : vector<1x16x32xf32> to vector<16x32xf32>
    %11 = vector.shape_cast %8 : vector<16x32xf32> to vector<1x16x32xf32>
    tpu.vector_store %arg5[%c0_7, %c0_8, %c0_9], %11 {strides = array<i32>} : memref<1x16x32xf32, #tpu.memory_space<vmem>>, vector<1x16x32xf32>,
    %12 = vector.extract_strided_slice %3 {offsets = [0, 64], sizes = [16, 32], strides = [1, 1]} : vector<16x96xf32> to vector<16x32xf32>
    %c0_10 = arith.constant 0 : index
    %c0_11 = arith.constant 0 : index
    %c0_12 = arith.constant 0 : index
    %13 = vector.load %arg6[%c0_10, %c0_11, %c0_12] : memref<1x16x32xf32, #tpu.memory_space<vmem>>, vector<1x16x32xf32>
    %14 = vector.shape_cast %13 : vector<1x16x32xf32> to vector<16x32xf32>
    %15 = vector.shape_cast %12 : vector<16x32xf32> to vector<1x16x32xf32>
    tpu.vector_store %arg6[%c0_10, %c0_11, %c0_12], %15 {strides = array<i32>} : memref<1x16x32xf32, #tpu.memory_space<vmem>>, vector<1x16x32xf32>,
    return
  }
  func.func @transform_0(%arg0: i32, %arg1: i32) -> (i32, i32, i32) {
    %c0_i32 = arith.constant 0 : i32
    %c0_i32_0 = arith.constant 0 : i32
    return %arg0, %arg1, %c0_i32 : i32, i32, i32
  }
  func.func @transform_1(%arg0: i32, %arg1: i32) -> (i32, i32) {
    %c0_i32 = arith.constant 0 : i32
    %c0_i32_0 = arith.constant 0 : i32
    %c0_i32_1 = arith.constant 0 : i32
    return %c0_i32, %c0_i32_0 : i32, i32
  }
  func.func @transform_2(%arg0: i32, %arg1: i32) -> (i32, i32, i32) {
    %c0_i32 = arith.constant 0 : i32
    %c0_i32_0 = arith.constant 0 : i32
    return %arg0, %arg1, %c0_i32 : i32, i32, i32
  }
  func.func @transform_3(%arg0: i32, %arg1: i32) -> (i32, i32, i32) {
    %c0_i32 = arith.constant 0 : i32
    %c0_i32_0 = arith.constant 0 : i32
    return %arg0, %arg1, %c0_i32 : i32, i32, i32
  }
  func.func @transform_4(%arg0: i32, %arg1: i32) -> (i32, i32, i32) {
    %c0_i32 = arith.constant 0 : i32
    %c0_i32_0 = arith.constant 0 : i32
    return %arg0, %arg1, %c0_i32 : i32, i32, i32
  }
}

module attributes {stable_mosaic.version = 11 : i64} {
  func.func @qkv_proj_kernel(%arg0: i32, %arg1: i32, %arg2: memref<1x16x32xf32, #tpu.memory_space<vmem>>, %arg3: memref<32x96xf32, #tpu.memory_space<vmem>>, %arg4: memref<1x16x32xf32, #tpu.memory_space<vmem>>, %arg5: memref<1x16x32xf32, #tpu.memory_space<vmem>>, %arg6: memref<1x16x32xf32, #tpu.memory_space<vmem>>) attributes {dimension_semantics = [#tpu.dimension_semantics<parallel>, #tpu.dimension_semantics<parallel>], iteration_bounds = array<i64: 2, 1>, scalar_prefetch = 0 : i64, scratch_operands = 0 : i64, tpu.core_type = #tpu.core_type<tc>, window_params = [{transform_indices = @transform_0, window_bounds = array<i64: 1, 16, 32>}, {pipeline_mode = #tpu.pipeline_mode<synchronous>, transform_indices = @transform_1, window_bounds = array<i64: 32, 96>}, {transform_indices = @transform_2, window_bounds = array<i64: 1, 16, 32>}, {transform_indices = @transform_3, window_bounds = array<i64: 1, 16, 32>}, {transform_indices = @transform_4, window_bounds = array<i64: 1, 16, 32>}]} {
    %c0 = arith.constant 0 : index
    %c0_0 = arith.constant 0 : index
    %c0_1 = arith.constant 0 : index
    %0 = vector.load %arg2[%c0, %c0_0, %c0_1] : memref<1x16x32xf32, #tpu.memory_space<vmem>>, vector<1x16x32xf32>
    %1 = vector.shape_cast %0 : vector<1x16x32xf32> to vector<16x32xf32>
    %c0_2 = arith.constant 0 : index
    %c0_3 = arith.constant 0 : index
    %2 = vector.load %arg3[%c0_2, %c0_3] : memref<32x96xf32, #tpu.memory_space<vmem>>, vector<32x96xf32>
    %cst = arith.constant dense<0.000000e+00> : vector<16x96xf32>
    %3 = tpu.matmul %1, %2, %cst {dimension_numbers = #tpu.dot_dimension_numbers<[1], [0], [0], [1], [0, 0, 1, 1], [], []>} : vector<16x32xf32>, vector<32x96xf32>, vector<16x96xf32> -> vector<16x96xf32>
    %4 = vector.extract_strided_slice %3 {offsets = [0, 0], sizes = [16, 32], strides = [1, 1]} : vector<16x96xf32> to vector<16x32xf32>
    %c0_4 = arith.constant 0 : index
    %c0_5 = arith.constant 0 : index
    %c0_6 = arith.constant 0 : index
    %5 = vector.load %arg4[%c0_4, %c0_5, %c0_6] : memref<1x16x32xf32, #tpu.memory_space<vmem>>, vector<1x16x32xf32>
    %6 = vector.shape_cast %5 : vector<1x16x32xf32> to vector<16x32xf32>
    %7 = vector.shape_cast %4 : vector<16x32xf32> to vector<1x16x32xf32>
    tpu.vector_store %arg4[%c0_4, %c0_5, %c0_6], %7 {strides = array<i32>} : memref<1x16x32xf32, #tpu.memory_space<vmem>>, vector<1x16x32xf32>,
    %8 = vector.extract_strided_slice %3 {offsets = [0, 32], sizes = [16, 32], strides = [1, 1]} : vector<16x96xf32> to vector<16x32xf32>
    %c0_7 = arith.constant 0 : index
    %c0_8 = arith.constant 0 : index
    %c0_9 = arith.constant 0 : index
    %9 = vector.load %arg5[%c0_7, %c0_8, %c0_9] : memref<1x16x32xf32, #tpu.memory_space<vmem>>, vector<1x16x32xf32>
    %10 = vector.shape_cast %9 : vector<1x16x32xf32> to vector<16x32xf32>
    %11 = vector.shape_cast %8 : vector<16x32xf32> to vector<1x16x32xf32>
    tpu.vector_store %arg5[%c0_7, %c0_8, %c0_9], %11 {strides = array<i32>} : memref<1x16x32xf32, #tpu.memory_space<vmem>>, vector<1x16x32xf32>,
    %12 = vector.extract_strided_slice %3 {offsets = [0, 64], sizes = [16, 32], strides = [1, 1]} : vector<16x96xf32> to vector<16x32xf32>
    %c0_10 = arith.constant 0 : index
    %c0_11 = arith.constant 0 : index
    %c0_12 = arith.constant 0 : index
    %13 = vector.load %arg6[%c0_10, %c0_11, %c0_12] : memref<1x16x32xf32, #tpu.memory_space<vmem>>, vector<1x16x32xf32>
    %14 = vector.shape_cast %13 : vector<1x16x32xf32> to vector<16x32xf32>
    %15 = vector.shape_cast %12 : vector<16x32xf32> to vector<1x16x32xf32>
    tpu.vector_store %arg6[%c0_10, %c0_11, %c0_12], %15 {strides = array<i32>} : memref<1x16x32xf32, #tpu.memory_space<vmem>>, vector<1x16x32xf32>,
    return
  }
  func.func @transform_0(%arg0: i32, %arg1: i32) -> (i32, i32, i32) {
    %c0_i32 = arith.constant 0 : i32
    %c0_i32_0 = arith.constant 0 : i32
    return %arg0, %arg1, %c0_i32 : i32, i32, i32
  }
  func.func @transform_1(%arg0: i32, %arg1: i32) -> (i32, i32) {
    %c0_i32 = arith.constant 0 : i32
    %c0_i32_0 = arith.constant 0 : i32
    %c0_i32_1 = arith.constant 0 : i32
    return %c0_i32, %c0_i32_0 : i32, i32
  }
  func.func @transform_2(%arg0: i32, %arg1: i32) -> (i32, i32, i32) {
    %c0_i32 = arith.constant 0 : i32
    %c0_i32_0 = arith.constant 0 : i32
    return %arg0, %arg1, %c0_i32 : i32, i32, i32
  }
  func.func @transform_3(%arg0: i32, %arg1: i32) -> (i32, i32, i32) {
    %c0_i32 = arith.constant 0 : i32
    %c0_i32_0 = arith.constant 0 : i32
    return %arg0, %arg1, %c0_i32 : i32, i32, i32
  }
  func.func @transform_4(%arg0: i32, %arg1: i32) -> (i32, i32, i32) {
    %c0_i32 = arith.constant 0 : i32
    %c0_i32_0 = arith.constant 0 : i32
    return %arg0, %arg1, %c0_i32 : i32, i32, i32
  }
}

</mosaic_0001>

<bundles_post_ra>
// kernel: tpu_custom_call.1
= control target key start
LH: loop header
LB: loop body
LE: loop exit
PB: predicated region body
PF: predicated region fallthrough
CT: control target
= control target key end

     0   :  { %10 = vsyncpa [#allocation3], 0  ;;  %s1314_s0 = inlined_call_operand.hbm [shape: f32[2,16,32], index: 0, kind: input, shape index: {}]   ;;  %s1315_s1 = inlined_call_operand.hbm [shape: f32[32,96], index: 1, kind: input, shape index: {}]   ;;  %s1316_s2 = inlined_call_operand.hbm [shape: f32[2,16,32], index: 2, kind: output, shape index: {0}]   ;;  %s1317_s3 = inlined_call_operand.hbm [shape: f32[2,16,32], index: 3, kind: output, shape index: {1}]   ;;  %s1318_s4 = inlined_call_operand.hbm [shape: f32[2,16,32], index: 4, kind: output, shape index: {2}]  }
   0x1   :  { %12 = vsyncpa [#allocation3 + $0x1], 0 }
   0x2   :  { %13 = vsyncpa [#allocation6], 0 }
   0x3   :  { %14 = vsyncpa [#allocation4], 0 }
   0x4   :  { %16 = vsyncpa [#allocation4 + $0x1], 0 }
   0x5   :  { %17 = vsyncpa [#allocation9], 0 }
   0x6   :  { %19 = vsyncpa [#allocation9 + $0x1], 0  ;;  %s996_s15 = smov 0   ;;  %s998_s16 = smov 0  }
   0x7   :  { %s1000_s17 = smov 0   ;;  %s1002_s18 = smov 0  }
   0x8   :  { %s1004_s19 = smov 0   ;;  %s1006_s20 = smov 0  }
   0x9 LB: > { %s1027_s21 = sadd.s32 4294967295, %s958_s20   ;;  %s1322_s22 = sadd.s32 4294967294, %s958_s20   ;;  %s958_s20 = sphi %s1006_s20, %s25_s20   ;;  %s954_s19 = sphi %s1004_s19, %s1342_s19   ;;  %s950_s18 = sphi %s1002_s18, %s1341_s18   ;;  %s946_s17 = sphi %s1000_s17, %s1340_s17   ;;  %s942_s16 = sphi %s998_s16, %s1339_s16   ;;  %s938_s15 = sphi %s996_s15, %s1338_s15  }
   0xa   : > { %p59_p0 = scmp.ne.s32.totalorder %s942_s16, %s938_s15  ;;  %p1319_p1 = scmp.eq.s32.totalorder %s1027_s21, 0 }
   0xb   : > { %p112_p3 = scmp.eq.s32.totalorder %s1322_s22, 1  ;;  %p611_p5 = scmp.ge.s32.totalorder %s958_s20, 1 }
   0xc   : > { %p1038_p4 = por %p1319_p1, %p59_p0  ;;  %p175_p7 = scmp.lt.s32.totalorder %s958_s20, 3 }
   0xd   : > { %p1043_p6 = por %p112_p3, %p59_p0  ;;  %s960_s26 = smov [#allocation5]  }
   0xe   : > { %s1323_s23 = scalar_select %p1038_p4, 1, 0 }
   0xf   : > { %s1324_s24 = scalar_select %p1043_p6, 1, 0 }
  0x10   : > { %p1048_p8 = pnand %p611_p5, %p175_p7  ;;  %s187_s27 = sshll.u32 %s960_s26, 4  ;;  %s188_s27 = int_to_ptr.vmem [resolvable:$true] %s187_s27 }
  0x11   : > { %s37_s29 = sadd.s32 1, %s954_s19  ;;  %s754_s6 = scalar_lea.hbm %s1315_s1, 512 }
  0x12   : > { %s1325_s25 = scalar_select %p1048_p8, 1, 0 }
  0x13   : > { %p677_p9 = pneg %p1048_p8  ;;  %p755_p12 = scmp.ne.s32.totalorder %s1315_s1, %s754_s6 }
  0x14   : > { %p761_p5 = scmp.lt.u32.totalorder %s754_s6, %s1315_s1 }
  0x15   : > { %p1057_p11 = pnand %p677_p9, %p1319_p1 }
  0x17   : > { %p756_p13 = pneg %p1057_p11 }
  0x19   : > { %p757_p0 = pnand %p756_p13, %p755_p12 }
  0x1b   : > { %p758_p3 = pneg %p757_p0 }
  0x1d   : > { %p763_p7 = pnand %p761_p5, %p758_p3 }
  0x1f   : > { %766 = shalt.err (!%p763_p7)
}
  0x20   : > { %s767_s11 = scalar_lea.vmem %s188_s27, 512  ;;  %p775_p2 = scmp.lt.s32.totalorder %s188_s27, %s188_s27 }
  0x21   : > { %p768_p9 = scmp.ne.s32.totalorder %s188_s27, %s767_s11  ;;  %p776_p6 = scmp.lt.s32.totalorder %s767_s11, %s767_s11 }
  0x23   : > { %p770_p10 = pnand %p768_p9, %p756_p13  ;;  %p777_p4 = por %p776_p6, %p775_p2 }
  0x25   : > { %p771_p1 = pneg %p770_p10 }
  0x27   : > { %p778_p8 = pnand %p777_p4, %p771_p1 }
  0x29   : > { %781 = shalt.err (!%p778_p8)
}
  0x2a   : > { %s961_s12 = smov 128   ;;  %s962_s13 = smov 8  }
  0x2b   : > { %680 = dma.hbm_to_vmem [thread:$0]  (!%p1057_p11), %s1315_s1, 512, %s188_s27, [#allocation6], %s961_s12, %s961_s12, %s962_s13  }
  0x2c   : > { %p39_p1 = scmp.ge.s32.totalorder %s37_s29, 2  ;;  %s46_s30 = sadd.s32 1, %s946_s17 }
  0x2d   : > { %p53_p2 = scmp.ne.s32.totalorder %s946_s17, %s942_s16  ;;  %p54_p4 = scmp.eq.s32.totalorder %s958_s20, 0 }
  0x2e   : > { %s1344_s29 = smov (%p39_p1, %s37_s29), 0  ;;  %p1328_p8 = scmp.eq.s32.totalorder %s1027_s21, 1 }
  0x2f   : > { %p1087_p6 = por %p54_p4, %p53_p2  ;;  %s41_s6 = ssub.s32 %s954_s19, %s1344_s29 }
  0x30   : > { %p1093_p10 = por %p1328_p8, %p53_p2  ;;  %p696_p12 = scmp.lt.s32.totalorder %s958_s20, 2 }
  0x31   : > { %p44_p11 = scmp.eq.s32.totalorder %s41_s6, 0  ;;  %s201_s27 = sand.u32 1, %s946_s17  }
  0x32   : > { %s614_s7 = sshll.u32 %s201_s27, 4  ;;  %s636_s9 = sshll.u32 %s954_s19, 8 }
  0x33   : > { %s1102_s8 = scalar_select %p44_p11, %s946_s17, %s46_s30  }
  0x34   : > { %s1108_s14 = scalar_lea.hbm %s1314_s0, %s636_s9  ;;  %s205_s26 = scalar_lea.vmem [#allocation2], %s614_s7 }
  0x35   : > { %s214_s22 = sshll.u32 %s205_s26, 4  ;;  %p1114_p13 = pnand %p696_p12, %p1087_p6  ;;  %s1110_s22 = int_to_ptr.vmem [resolvable:$true] %s214_s22 }
  0x36   : > { %s1118_s30 = scalar_lea.sflag [#allocation3], %s201_s27  ;;  %s782_s10 = scalar_lea.hbm %s1108_s14, 256 }
  0x37   : > { %p783_p0 = scmp.ne.s32.totalorder %s1108_s14, %s782_s10  ;;  %p784_p3 = pneg %p1114_p13 }
  0x38   : > { %s787_s5 = scalar_lea.hbm %s1314_s0, 512  ;;  %p788_p9 = scmp.lt.u32.totalorder %s1108_s14, %s1314_s0 }
  0x39   : > { %p785_p5 = pnand %p784_p3, %p783_p0  ;;  %p789_p1 = scmp.lt.u32.totalorder %s787_s5, %s782_s10 }
  0x3a   : > { %p791_p4 = scmp.lt.u32.totalorder %s782_s10, %s1108_s14 }
  0x3b   : > { %p786_p7 = pneg %p785_p5  ;;  %p790_p2 = por %p789_p1, %p788_p9 }
  0x3d   : > { %p792_p6 = por %p791_p4, %p790_p2 }
  0x3f   : > { %p793_p8 = pnand %p792_p6, %p786_p7 }
  0x41   : > { %796 = shalt.err (!%p793_p8)
}
  0x42   : > { %s797_s27 = scalar_lea.vmem %s1110_s22, 256  ;;  %s963_s7 = smov [#allocation2]  }
  0x43   : > { %p798_p12 = scmp.ne.s32.totalorder %s1110_s22, %s797_s27  ;;  %s802_s9 = sshll.u32 %s963_s7, 4  ;;  %s803_s9 = int_to_ptr.vmem [resolvable:$false] %s802_s9 }
  0x44   : > { %s804_s11 = scalar_lea.vmem %s803_s9, 512  ;;  %p805_p5 = scmp.lt.s32.totalorder %s1110_s22, %s803_s9 }
  0x45   : > { %p800_p11 = pnand %p798_p12, %p784_p3  ;;  %p806_p9 = scmp.lt.s32.totalorder %s804_s11, %s797_s27 }
  0x47   : > { %p801_p0 = pneg %p800_p11  ;;  %p807_p1 = por %p806_p9, %p805_p5 }
  0x49   : > { %p808_p2 = pnand %p807_p1, %p801_p0 }
  0x4b   : > { %811 = shalt.err (!%p808_p2)
}
  0x4c   : > { %684 = dma.hbm_to_vmem [thread:$0]  (!%p1114_p13), %s1108_s14, 256, %s1110_s22, %s1118_s30, %s961_s12, %s961_s12, %s962_s13  }
  0x4d   : > { %p1331_p3 = scmp.ne.s32.totalorder %s1325_s25, 0 }
  0x4e   : > { %s1152_s10 = sand.u32 (!%p1331_p3), 1, %s942_s16   ;;  %p1332_p7 = scmp.ne.s32.totalorder (!%p1331_p3), %s1323_s23, 0 }
  0x4f   : > { %226 = sbr.rel (%p1331_p3) target bundleno = 478 (0x1de), region = 28  ;;  %s1155_s5 = sshll.u32 (!%p1331_p3), %s1152_s10, 4 }
  0x50   : > { %s229_s6 = scalar_lea.sflag (!%p1331_p3), [#allocation3], %s1152_s10  ;;  %s232_s26 = scalar_lea.vmem (!%p1331_p3), [#allocation2], %s1155_s5 }
  0x56   : > { %921 = dma.done.wait (%p1332_p7), %s229_s6, 256  }
  0x57   : > { %923 = vsyncadd (%p1332_p7), %s229_s6, 4294967040  ;;  %p1333_p13 = scmp.eq.s32.totalorder %s1027_s21, 0 }
  0x59   : > { %925 = dma.done.wait (%p1333_p13), [#allocation6], 512   ;;  %p1334_p4 = pmov %p1333_p13 }
  0x5a   : > { %vm281_vm0 = vcmask 261120   ;;  %v277_v0 = vld [vmem:[#allocation5] sm:$0xff]  ;;  %v278_v1 = vld [vmem:[#allocation5 + $0x8] sm:$0xff]  ;;  %v279_v2 = vld [vmem:[#allocation5 + $0x10] sm:$0xff]  ;;  %s256_s22 = scalar_lea.vmem [#allocation7], %s1155_s5  ;;  %s1171_s25 = sshll.u32 %s950_s18, 8 }
  0x5b   : > { %927 = vsyncadd (%p1334_p4), [#allocation6], 4294966784  ;;  %v657_v3 = vpack.c.bf16 %v278_v1, %v277_v0  ;;  %v280_v4 = vld [vmem:[#allocation5 + $0x18] sm:$0xff]  ;;  %v275_v5 = vld [vmem:[%s232_s26] sm:$0xff]  ;;  %s409_s23 = sshll.u32 %s256_s22, 4  ;;  %s1179_s14 = scalar_lea.hbm %s1316_s2, %s1171_s25  ;;  %s1173_s23 = int_to_ptr.vmem [resolvable:$true] %s409_s23 }
  0x5c   : > { %v661_v6 = vpack.c.bf16 %v280_v4, %v279_v2  ;;  %654 = vmatprep.mubr.msk.f32.mxu0 %vm281_vm0, %v275_v5  ;;  %v276_v7 = vld [vmem:[%s232_s26 + $0x8] sm:$0xff]  ;;  %s964_s30 = smov 64   ;;  %s965_s18 = smov 96  }
  0x5d   : > { %658 = vmatprep.subr.bf16.mxu0 %v657_v3  ;;  %s384_s27 = scalar_lea.sflag [#allocation4], %s1152_s10  ;;  %s812_s7 = scalar_lea.vmem %s1173_s23, 256 }
  0x5e   : > { %660 = vmatpush3.bf16.msra.mxu0 %v657_v3  ;;  %p813_p6 = scmp.ne.s32.totalorder %s1173_s23, %s812_s7  ;;  %s966_s9 = smov [#allocation7]  }
  0x5f   : > { %662 = vmatprep.subr.bf16.mxu0 %v661_v6  ;;  %s816_s11 = sshll.u32 %s966_s9, 4  ;;  %s817_s11 = int_to_ptr.vmem [resolvable:$false] %s816_s11 }
  0x60   : > { %p814_p8 = pnand %p813_p6, %p1093_p10  ;;  %s818_s6 = scalar_lea.vmem %s817_s11, 512 }
  0x61   : > { %p819_p11 = scmp.lt.s32.totalorder %s1173_s23, %s817_s11  ;;  %p820_p0 = scmp.lt.s32.totalorder %s818_s6, %s812_s7 }
  0x62   : > { %664 = vmatpush3.bf16.msra.mxu0 %v661_v6  ;;  %p815_p12 = pneg %p814_p8 }
  0x63   : > { %p821_p5 = por %p820_p0, %p819_p11 }
  0x65   : > { %655 = vmatmul.mubr.msk.f32.vlgmr.msra.gmra.mrb[0].mxu0 %vm281_vm0, %v276_v7  ;;  %p822_p9 = pnand %p821_p5, %p815_p12 }
 0x138   : > { %v656_v8 = vpop.f32.mrb[0].mxu0 }
 0x139   : > { %364 = vst.msk [vmem:[%s256_s22 + $0x8] sm:$0xff] %vm281_vm0, %v656_v8  ;;  %v354_v9 = vpop.f32.mrb[1].mxu0 }
 0x13a   : > { %363 = vst.msk [vmem:[%s256_s22] sm:$0xff] %vm281_vm0, %v354_v9  ;;  %375 = vrot.lane.b32.xlu1 %v354_v9, %s964_s30  ;;  %367 = vrot.lane.b32.xlu0 %v354_v9, %s965_s18 }
 0x13b   : > { %825 = shalt.err (!%p822_p9)
}
 0x13c   : > { %s826_s26 = scalar_lea.hbm %s1179_s14, 256  ;;  %s830_s13 = scalar_lea.hbm %s1316_s2, 512 }
 0x13d   : > { %p827_p1 = scmp.ne.s32.totalorder %s1179_s14, %s826_s26  ;;  %p831_p7 = scmp.lt.u32.totalorder %s1179_s14, %s1316_s2 }
 0x13e   : > { %p832_p13 = scmp.lt.u32.totalorder %s830_s13, %s826_s26  ;;  %p834_p6 = scmp.lt.u32.totalorder %s826_s26, %s1179_s14 }
 0x13f   : > { %p828_p2 = pnand %p827_p1, %p1093_p10 }
 0x140   : > { %p833_p4 = por %p832_p13, %p831_p7 }
 0x141   : > { %p829_p3 = pneg %p828_p2 }
 0x142   : > { %p835_p8 = por %p834_p6, %p833_p4 }
 0x144   : > { %p836_p12 = pnand %p835_p8, %p829_p3 }
 0x146   : > { %839 = shalt.err (!%p836_p12)
}
 0x147   : > { %s967_s7 = smov 128   ;;  %s968_s6 = smov 8   ;;  %377 = vrot.lane.b32.xlu1 %v656_v8, %s964_s30  ;;  %369 = vrot.lane.b32.xlu0 %v656_v8, %s965_s18 }
 0x148   : > { %671 = dma.vmem_to_hbm [thread:$0]  (%p1093_p10), %s1173_s23, 256, %s1179_s14, %s384_s27, %s967_s7, %s967_s7, %s968_s6  }
 0x149   : > { %s263_s26 = scalar_lea.vmem [#allocation8], %s1155_s5  ;;  %s388_s12 = sand.u32 1, %s1027_s21  }
 0x14a   : > { %s427_s22 = sshll.u32 %s263_s26, 4  ;;  %s270_s13 = scalar_lea.vmem [#allocation10], %s1155_s5  ;;  %s1219_s22 = int_to_ptr.vmem [resolvable:$true] %s427_s22 }
 0x14b   : > { %s445_s9 = sshll.u32 %s270_s13, 4  ;;  %s1225_s14 = scalar_lea.hbm %s1317_s3, %s1171_s25  ;;  %s1227_s9 = int_to_ptr.vmem [resolvable:$true] %s445_s9 }
 0x14c   : > { %s1233_s30 = scalar_lea.hbm %s1318_s4, %s1171_s25  ;;  %s1237_s18 = scalar_lea.sflag [#allocation9], %s388_s12 }
 0x14d   : > { %s840_s27 = scalar_lea.vmem %s1219_s22, 256  ;;  %s969_s11 = smov [#allocation8]  }
 0x14e   : > { %p841_p11 = scmp.ne.s32.totalorder %s1219_s22, %s840_s27  ;;  %s844_s10 = sshll.u32 %s969_s11, 4  ;;  %s845_s10 = int_to_ptr.vmem [resolvable:$false] %s844_s10 }
 0x14f   : > { %s846_s23 = scalar_lea.vmem %s845_s10, 512  ;;  %p847_p9 = scmp.lt.s32.totalorder %s1219_s22, %s845_s10 }
 0x150   : > { %p842_p0 = pnand %p841_p11, %p1093_p10  ;;  %p848_p1 = scmp.lt.s32.totalorder %s846_s23, %s840_s27 }
 0x152   : > { %p843_p5 = pneg %p842_p0  ;;  %p849_p2 = por %p848_p1, %p847_p9 }
 0x154   : > { %p850_p3 = pnand %p849_p2, %p843_p5 }
 0x1ac   : > { %v376_v10 = vpop.permute.xlu1 %375  ;;  %v368_v11 = vpop.permute.xlu0 %367 }
 0x1ad   : > { %381 = vst.msk [vmem:[%s270_s13] sm:$0xff] %vm281_vm0, %v376_v10  ;;  %373 = vst.msk [vmem:[%s263_s26] sm:$0xff] %vm281_vm0, %v368_v11 }
 0x1b9   : > { %v378_v12 = vpop.permute.xlu1 %377  ;;  %v370_v13 = vpop.permute.xlu0 %369 }
 0x1ba   : > { %382 = vst.msk [vmem:[%s270_s13 + $0x8] sm:$0xff] %vm281_vm0, %v378_v12  ;;  %374 = vst.msk [vmem:[%s263_s26 + $0x8] sm:$0xff] %vm281_vm0, %v370_v13 }
 0x1bb   : > { %853 = shalt.err (!%p850_p3)
}
 0x1bc   : > { %s854_s25 = scalar_lea.hbm %s1225_s14, 256  ;;  %s858_s13 = scalar_lea.hbm %s1317_s3, 512 }
 0x1bd   : > { %p855_p7 = scmp.ne.s32.totalorder %s1225_s14, %s854_s25  ;;  %p859_p6 = scmp.lt.u32.totalorder %s1225_s14, %s1317_s3 }
 0x1be   : > { %p860_p8 = scmp.lt.u32.totalorder %s858_s13, %s854_s25  ;;  %p862_p11 = scmp.lt.u32.totalorder %s854_s25, %s1225_s14 }
 0x1bf   : > { %p856_p13 = pnand %p855_p7, %p1093_p10 }
 0x1c0   : > { %p861_p12 = por %p860_p8, %p859_p6 }
 0x1c1   : > { %p857_p4 = pneg %p856_p13 }
 0x1c2   : > { %p863_p0 = por %p862_p11, %p861_p12 }
 0x1c4   : > { %p864_p5 = pnand %p863_p0, %p857_p4 }
 0x1c6   : > { %867 = shalt.err (!%p864_p5)
}
 0x1c7   : > { %672 = dma.vmem_to_hbm [thread:$0]  (%p1093_p10), %s1219_s22, 256, %s1225_s14, %s1237_s18, %s967_s7, %s967_s7, %s968_s6  }
 0x1c8   : > { %s868_s27 = scalar_lea.vmem %s1227_s9, 256  ;;  %s970_s11 = smov [#allocation10]  }
 0x1c9   : > { %p869_p9 = scmp.ne.s32.totalorder %s1227_s9, %s868_s27  ;;  %s872_s10 = sshll.u32 %s970_s11, 4  ;;  %s873_s10 = int_to_ptr.vmem [resolvable:$false] %s872_s10 }
 0x1ca   : > { %s874_s23 = scalar_lea.vmem %s873_s10, 512  ;;  %p875_p3 = scmp.lt.s32.totalorder %s1227_s9, %s873_s10 }
 0x1cb   : > { %p870_p1 = pnand %p869_p9, %p1093_p10  ;;  %p876_p7 = scmp.lt.s32.totalorder %s874_s23, %s868_s27 }
 0x1cd   : > { %p871_p2 = pneg %p870_p1  ;;  %p877_p13 = por %p876_p7, %p875_p3 }
 0x1cf   : > { %p878_p4 = pnand %p877_p13, %p871_p2 }
 0x1d1   : > { %881 = shalt.err (!%p878_p4)
}
 0x1d2   : > { %s882_s22 = scalar_lea.hbm %s1233_s30, 256  ;;  %s886_s26 = scalar_lea.hbm %s1318_s4, 512 }
 0x1d3   : > { %p883_p6 = scmp.ne.s32.totalorder %s1233_s30, %s882_s22  ;;  %p887_p11 = scmp.lt.u32.totalorder %s1233_s30, %s1318_s4 }
 0x1d4   : > { %p888_p0 = scmp.lt.u32.totalorder %s886_s26, %s882_s22  ;;  %p890_p9 = scmp.lt.u32.totalorder %s882_s22, %s1233_s30 }
 0x1d5   : > { %p884_p8 = pnand %p883_p6, %p1093_p10 }
 0x1d6   : > { %p889_p5 = por %p888_p0, %p887_p11 }
 0x1d7   : > { %p885_p12 = pneg %p884_p8 }
 0x1d8   : > { %p891_p1 = por %p890_p9, %p889_p5 }
 0x1da   : > { %p892_p2 = pnand %p891_p1, %p885_p12 }
 0x1dc   : > { %895 = shalt.err (!%p892_p2)
}
 0x1dd   : > { %673 = dma.vmem_to_hbm [thread:$0]  (%p1093_p10), %s1227_s9, 256, %s1233_s30, %s1237_s18, %s967_s7, %s967_s7, %s968_s6  }
 0x1de PF: > { %s460_s21 = sand.u32 1, %s938_s15   ;;  %p1335_p3 = scmp.ne.s32.totalorder %s1324_s24, 0 }
 0x1df   : > { %p1336_p7 = scmp.ge.s32.totalorder %s958_s20, 2  ;;  %s461_s5 = scalar_lea.sflag [#allocation4], %s460_s21 }
 0x1e1   : > { %p686_p13 = pnand %p1336_p7, %p1335_p3 }
 0x1e3   : > { %929 = dma.done.wait (!%p686_p13), %s461_s5, 256  }
 0x1e4   : > { %931 = vsyncadd (!%p686_p13), %s461_s5, 4294967040  ;;  %s1337_s28 = sadd.s32 4294967294, %s958_s20  }
 0x1e5   : > { %s469_s27 = sand.u32 1, %s1337_s28  }
 0x1e6   : > { %s470_s11 = scalar_lea.sflag [#allocation9], %s469_s27 }
 0x1e7   : > { %933 = dma.done.wait (!%p686_p13), %s470_s11, 512  }
 0x1e8   : > { %935 = vsyncadd (!%p686_p13), %s470_s11, 4294966784  ;;  %s25_s20 = sadd.s32 1, %s958_s20   ;;  %s1338_s15 = smov %s942_s16 }
 0x1e9   : > { %p22_p10 = scmp.ge.s32.totalorder %s25_s20, 4   ;;  %s1339_s16 = smov %s946_s17 }
 0x1ea   : > { %s1340_s17 = smov %s1102_s8  ;;  %s1341_s18 = smov %s954_s19 }
 0x1eb   : > { %s1342_s19 = smov %s1344_s29  ;;  %24 = sbr.rel (!%p22_p10) target bundleno = 9 (0x9), region = 109 }
 0x1f2   :  { %484 = vsyncpa [#allocation3], 1 }
 0x1f3   :  { %486 = vsyncpa [#allocation3 + $0x1], 1 }
 0x1f4   :  { %487 = vsyncpa [#allocation6], 1 }
 0x1f5   :  { %488 = vsyncpa [#allocation4], 1 }
 0x1f6   :  { %490 = vsyncpa [#allocation4 + $0x1], 1 }
 0x1f7   :  { %491 = vsyncpa [#allocation9], 1 }
 0x1f8   :  { %493 = vsyncpa [#allocation9 + $0x1], 1 }

// kernel: tpu_custom_call.1
= control target key start
LH: loop header
LB: loop body
LE: loop exit
PB: predicated region body
PF: predicated region fallthrough
CT: control target
= control target key end

     0   :  { %10 = vsyncpa [#allocation3], 0  ;;  %s1314_s0 = inlined_call_operand.hbm [shape: f32[2,16,32], index: 0, kind: input, shape index: {}]   ;;  %s1315_s1 = inlined_call_operand.hbm [shape: f32[32,96], index: 1, kind: input, shape index: {}]   ;;  %s1316_s2 = inlined_call_operand.hbm [shape: f32[2,16,32], index: 2, kind: output, shape index: {0}]   ;;  %s1317_s3 = inlined_call_operand.hbm [shape: f32[2,16,32], index: 3, kind: output, shape index: {1}]   ;;  %s1318_s4 = inlined_call_operand.hbm [shape: f32[2,16,32], index: 4, kind: output, shape index: {2}]  }
   0x1   :  { %12 = vsyncpa [#allocation3 + $0x1], 0 }
   0x2   :  { %13 = vsyncpa [#allocation6], 0 }
   0x3   :  { %14 = vsyncpa [#allocation4], 0 }
   0x4   :  { %16 = vsyncpa [#allocation4 + $0x1], 0 }
   0x5   :  { %17 = vsyncpa [#allocation9], 0 }
   0x6   :  { %19 = vsyncpa [#allocation9 + $0x1], 0  ;;  %s996_s15 = smov 0   ;;  %s998_s16 = smov 0  }
   0x7   :  { %s1000_s17 = smov 0   ;;  %s1002_s18 = smov 0  }
   0x8   :  { %s1004_s19 = smov 0   ;;  %s1006_s20 = smov 0  }
   0x9 LB: > { %s1027_s21 = sadd.s32 4294967295, %s958_s20   ;;  %s1322_s22 = sadd.s32 4294967294, %s958_s20   ;;  %s958_s20 = sphi %s1006_s20, %s25_s20   ;;  %s954_s19 = sphi %s1004_s19, %s1342_s19   ;;  %s950_s18 = sphi %s1002_s18, %s1341_s18   ;;  %s946_s17 = sphi %s1000_s17, %s1340_s17   ;;  %s942_s16 = sphi %s998_s16, %s1339_s16   ;;  %s938_s15 = sphi %s996_s15, %s1338_s15  }
   0xa   : > { %p59_p0 = scmp.ne.s32.totalorder %s942_s16, %s938_s15  ;;  %p1319_p1 = scmp.eq.s32.totalorder %s1027_s21, 0 }
   0xb   : > { %p112_p3 = scmp.eq.s32.totalorder %s1322_s22, 1  ;;  %p611_p5 = scmp.ge.s32.totalorder %s958_s20, 1 }
   0xc   : > { %p1038_p4 = por %p1319_p1, %p59_p0  ;;  %p175_p7 = scmp.lt.s32.totalorder %s958_s20, 3 }
   0xd   : > { %p1043_p6 = por %p112_p3, %p59_p0  ;;  %s960_s26 = smov [#allocation5]  }
   0xe   : > { %s1323_s23 = scalar_select %p1038_p4, 1, 0 }
   0xf   : > { %s1324_s24 = scalar_select %p1043_p6, 1, 0 }
  0x10   : > { %p1048_p8 = pnand %p611_p5, %p175_p7  ;;  %s187_s27 = sshll.u32 %s960_s26, 4  ;;  %s188_s27 = int_to_ptr.vmem [resolvable:$true] %s187_s27 }
  0x11   : > { %s37_s29 = sadd.s32 1, %s954_s19  ;;  %s754_s6 = scalar_lea.hbm %s1315_s1, 512 }
  0x12   : > { %s1325_s25 = scalar_select %p1048_p8, 1, 0 }
  0x13   : > { %p677_p9 = pneg %p1048_p8  ;;  %p755_p12 = scmp.ne.s32.totalorder %s1315_s1, %s754_s6 }
  0x14   : > { %p761_p5 = scmp.lt.u32.totalorder %s754_s6, %s1315_s1 }
  0x15   : > { %p1057_p11 = pnand %p677_p9, %p1319_p1 }
  0x17   : > { %p756_p13 = pneg %p1057_p11 }
  0x19   : > { %p757_p0 = pnand %p756_p13, %p755_p12 }
  0x1b   : > { %p758_p3 = pneg %p757_p0 }
  0x1d   : > { %p763_p7 = pnand %p761_p5, %p758_p3 }
  0x1f   : > { %766 = shalt.err (!%p763_p7)
}
  0x20   : > { %s767_s11 = scalar_lea.vmem %s188_s27, 512  ;;  %p775_p2 = scmp.lt.s32.totalorder %s188_s27, %s188_s27 }
  0x21   : > { %p768_p9 = scmp.ne.s32.totalorder %s188_s27, %s767_s11  ;;  %p776_p6 = scmp.lt.s32.totalorder %s767_s11, %s767_s11 }
  0x23   : > { %p770_p10 = pnand %p768_p9, %p756_p13  ;;  %p777_p4 = por %p776_p6, %p775_p2 }
  0x25   : > { %p771_p1 = pneg %p770_p10 }
  0x27   : > { %p778_p8 = pnand %p777_p4, %p771_p1 }
  0x29   : > { %781 = shalt.err (!%p778_p8)
}
  0x2a   : > { %s961_s12 = smov 128   ;;  %s962_s13 = smov 8  }
  0x2b   : > { %680 = dma.hbm_to_vmem [thread:$0]  (!%p1057_p11), %s1315_s1, 512, %s188_s27, [#allocation6], %s961_s12, %s961_s12, %s962_s13  }
  0x2c   : > { %p39_p1 = scmp.ge.s32.totalorder %s37_s29, 2  ;;  %s46_s30 = sadd.s32 1, %s946_s17 }
  0x2d   : > { %p53_p2 = scmp.ne.s32.totalorder %s946_s17, %s942_s16  ;;  %p54_p4 = scmp.eq.s32.totalorder %s958_s20, 0 }
  0x2e   : > { %s1344_s29 = smov (%p39_p1, %s37_s29), 0  ;;  %p1328_p8 = scmp.eq.s32.totalorder %s1027_s21, 1 }
  0x2f   : > { %p1087_p6 = por %p54_p4, %p53_p2  ;;  %s41_s6 = ssub.s32 %s954_s19, %s1344_s29 }
  0x30   : > { %p1093_p10 = por %p1328_p8, %p53_p2  ;;  %p696_p12 = scmp.lt.s32.totalorder %s958_s20, 2 }
  0x31   : > { %p44_p11 = scmp.eq.s32.totalorder %s41_s6, 0  ;;  %s201_s27 = sand.u32 1, %s946_s17  }
  0x32   : > { %s614_s7 = sshll.u32 %s201_s27, 4  ;;  %s636_s9 = sshll.u32 %s954_s19, 8 }
  0x33   : > { %s1102_s8 = scalar_select %p44_p11, %s946_s17, %s46_s30  }
  0x34   : > { %s1108_s14 = scalar_lea.hbm %s1314_s0, %s636_s9  ;;  %s205_s26 = scalar_lea.vmem [#allocation2], %s614_s7 }
  0x35   : > { %s214_s22 = sshll.u32 %s205_s26, 4  ;;  %p1114_p13 = pnand %p696_p12, %p1087_p6  ;;  %s1110_s22 = int_to_ptr.vmem [resolvable:$true] %s214_s22 }
  0x36   : > { %s1118_s30 = scalar_lea.sflag [#allocation3], %s201_s27  ;;  %s782_s10 = scalar_lea.hbm %s1108_s14, 256 }
  0x37   : > { %p783_p0 = scmp.ne.s32.totalorder %s1108_s14, %s782_s10  ;;  %p784_p3 = pneg %p1114_p13 }
  0x38   : > { %s787_s5 = scalar_lea.hbm %s1314_s0, 512  ;;  %p788_p9 = scmp.lt.u32.totalorder %s1108_s14, %s1314_s0 }
  0x39   : > { %p785_p5 = pnand %p784_p3, %p783_p0  ;;  %p789_p1 = scmp.lt.u32.totalorder %s787_s5, %s782_s10 }
  0x3a   : > { %p791_p4 = scmp.lt.u32.totalorder %s782_s10, %s1108_s14 }
  0x3b   : > { %p786_p7 = pneg %p785_p5  ;;  %p790_p2 = por %p789_p1, %p788_p9 }
  0x3d   : > { %p792_p6 = por %p791_p4, %p790_p2 }
  0x3f   : > { %p793_p8 = pnand %p792_p6, %p786_p7 }
  0x41   : > { %796 = shalt.err (!%p793_p8)
}
  0x42   : > { %s797_s27 = scalar_lea.vmem %s1110_s22, 256  ;;  %s963_s7 = smov [#allocation2]  }
  0x43   : > { %p798_p12 = scmp.ne.s32.totalorder %s1110_s22, %s797_s27  ;;  %s802_s9 = sshll.u32 %s963_s7, 4  ;;  %s803_s9 = int_to_ptr.vmem [resolvable:$false] %s802_s9 }
  0x44   : > { %s804_s11 = scalar_lea.vmem %s803_s9, 512  ;;  %p805_p5 = scmp.lt.s32.totalorder %s1110_s22, %s803_s9 }
  0x45   : > { %p800_p11 = pnand %p798_p12, %p784_p3  ;;  %p806_p9 = scmp.lt.s32.totalorder %s804_s11, %s797_s27 }
  0x47   : > { %p801_p0 = pneg %p800_p11  ;;  %p807_p1 = por %p806_p9, %p805_p5 }
  0x49   : > { %p808_p2 = pnand %p807_p1, %p801_p0 }
  0x4b   : > { %811 = shalt.err (!%p808_p2)
}
  0x4c   : > { %684 = dma.hbm_to_vmem [thread:$0]  (!%p1114_p13), %s1108_s14, 256, %s1110_s22, %s1118_s30, %s961_s12, %s961_s12, %s962_s13  }
  0x4d   : > { %p1331_p3 = scmp.ne.s32.totalorder %s1325_s25, 0 }
  0x4e   : > { %s1152_s10 = sand.u32 (!%p1331_p3), 1, %s942_s16   ;;  %p1332_p7 = scmp.ne.s32.totalorder (!%p1331_p3), %s1323_s23, 0 }
  0x4f   : > { %226 = sbr.rel (%p1331_p3) target bundleno = 478 (0x1de), region = 28  ;;  %s1155_s5 = sshll.u32 (!%p1331_p3), %s1152_s10, 4 }
  0x50   : > { %s229_s6 = scalar_lea.sflag (!%p1331_p3), [#allocation3], %s1152_s10  ;;  %s232_s26 = scalar_lea.vmem (!%p1331_p3), [#allocation2], %s1155_s5 }
  0x56   : > { %921 = dma.done.wait (%p1332_p7), %s229_s6, 256  }
  0x57   : > { %923 = vsyncadd (%p1332_p7), %s229_s6, 4294967040  ;;  %p1333_p13 = scmp.eq.s32.totalorder %s1027_s21, 0 }
  0x59   : > { %925 = dma.done.wait (%p1333_p13), [#allocation6], 512   ;;  %p1334_p4 = pmov %p1333_p13 }
  0x5a   : > { %vm281_vm0 = vcmask 261120   ;;  %v277_v0 = vld [vmem:[#allocation5] sm:$0xff]  ;;  %v278_v1 = vld [vmem:[#allocation5 + $0x8] sm:$0xff]  ;;  %v279_v2 = vld [vmem:[#allocation5 + $0x10] sm:$0xff]  ;;  %s256_s22 = scalar_lea.vmem [#allocation7], %s1155_s5  ;;  %s1171_s25 = sshll.u32 %s950_s18, 8 }
  0x5b   : > { %927 = vsyncadd (%p1334_p4), [#allocation6], 4294966784  ;;  %v657_v3 = vpack.c.bf16 %v278_v1, %v277_v0  ;;  %v280_v4 = vld [vmem:[#allocation5 + $0x18] sm:$0xff]  ;;  %v275_v5 = vld [vmem:[%s232_s26] sm:$0xff]  ;;  %s409_s23 = sshll.u32 %s256_s22, 4  ;;  %s1179_s14 = scalar_lea.hbm %s1316_s2, %s1171_s25  ;;  %s1173_s23 = int_to_ptr.vmem [resolvable:$true] %s409_s23 }
  0x5c   : > { %v661_v6 = vpack.c.bf16 %v280_v4, %v279_v2  ;;  %654 = vmatprep.mubr.msk.f32.mxu0 %vm281_vm0, %v275_v5  ;;  %v276_v7 = vld [vmem:[%s232_s26 + $0x8] sm:$0xff]  ;;  %s964_s30 = smov 64   ;;  %s965_s18 = smov 96  }
  0x5d   : > { %658 = vmatprep.subr.bf16.mxu0 %v657_v3  ;;  %s384_s27 = scalar_lea.sflag [#allocation4], %s1152_s10  ;;  %s812_s7 = scalar_lea.vmem %s1173_s23, 256 }
  0x5e   : > { %660 = vmatpush3.bf16.msra.mxu0 %v657_v3  ;;  %p813_p6 = scmp.ne.s32.totalorder %s1173_s23, %s812_s7  ;;  %s966_s9 = smov [#allocation7]  }
  0x5f   : > { %662 = vmatprep.subr.bf16.mxu0 %v661_v6  ;;  %s816_s11 = sshll.u32 %s966_s9, 4  ;;  %s817_s11 = int_to_ptr.vmem [resolvable:$false] %s816_s11 }
  0x60   : > { %p814_p8 = pnand %p813_p6, %p1093_p10  ;;  %s818_s6 = scalar_lea.vmem %s817_s11, 512 }
  0x61   : > { %p819_p11 = scmp.lt.s32.totalorder %s1173_s23, %s817_s11  ;;  %p820_p0 = scmp.lt.s32.totalorder %s818_s6, %s812_s7 }
  0x62   : > { %664 = vmatpush3.bf16.msra.mxu0 %v661_v6  ;;  %p815_p12 = pneg %p814_p8 }
  0x63   : > { %p821_p5 = por %p820_p0, %p819_p11 }
  0x65   : > { %655 = vmatmul.mubr.msk.f32.vlgmr.msra.gmra.mrb[0].mxu0 %vm281_vm0, %v276_v7  ;;  %p822_p9 = pnand %p821_p5, %p815_p12 }
 0x138   : > { %v656_v8 = vpop.f32.mrb[0].mxu0 }
 0x139   : > { %364 = vst.msk [vmem:[%s256_s22 + $0x8] sm:$0xff] %vm281_vm0, %v656_v8  ;;  %v354_v9 = vpop.f32.mrb[1].mxu0 }
 0x13a   : > { %363 = vst.msk [vmem:[%s256_s22] sm:$0xff] %vm281_vm0, %v354_v9  ;;  %375 = vrot.lane.b32.xlu1 %v354_v9, %s964_s30  ;;  %367 = vrot.lane.b32.xlu0 %v354_v9, %s965_s18 }
 0x13b   : > { %825 = shalt.err (!%p822_p9)
}
 0x13c   : > { %s826_s26 = scalar_lea.hbm %s1179_s14, 256  ;;  %s830_s13 = scalar_lea.hbm %s1316_s2, 512 }
 0x13d   : > { %p827_p1 = scmp.ne.s32.totalorder %s1179_s14, %s826_s26  ;;  %p831_p7 = scmp.lt.u32.totalorder %s1179_s14, %s1316_s2 }
 0x13e   : > { %p832_p13 = scmp.lt.u32.totalorder %s830_s13, %s826_s26  ;;  %p834_p6 = scmp.lt.u32.totalorder %s826_s26, %s1179_s14 }
 0x13f   : > { %p828_p2 = pnand %p827_p1, %p1093_p10 }
 0x140   : > { %p833_p4 = por %p832_p13, %p831_p7 }
 0x141   : > { %p829_p3 = pneg %p828_p2 }
 0x142   : > { %p835_p8 = por %p834_p6, %p833_p4 }
 0x144   : > { %p836_p12 = pnand %p835_p8, %p829_p3 }
 0x146   : > { %839 = shalt.err (!%p836_p12)
}
 0x147   : > { %s967_s7 = smov 128   ;;  %s968_s6 = smov 8   ;;  %377 = vrot.lane.b32.xlu1 %v656_v8, %s964_s30  ;;  %369 = vrot.lane.b32.xlu0 %v656_v8, %s965_s18 }
 0x148   : > { %671 = dma.vmem_to_hbm [thread:$0]  (%p1093_p10), %s1173_s23, 256, %s1179_s14, %s384_s27, %s967_s7, %s967_s7, %s968_s6  }
 0x149   : > { %s263_s26 = scalar_lea.vmem [#allocation8], %s1155_s5  ;;  %s388_s12 = sand.u32 1, %s1027_s21  }
 0x14a   : > { %s427_s22 = sshll.u32 %s263_s26, 4  ;;  %s270_s13 = scalar_lea.vmem [#allocation10], %s1155_s5  ;;  %s1219_s22 = int_to_ptr.vmem [resolvable:$true] %s427_s22 }
 0x14b   : > { %s445_s9 = sshll.u32 %s270_s13, 4  ;;  %s1225_s14 = scalar_lea.hbm %s1317_s3, %s1171_s25  ;;  %s1227_s9 = int_to_ptr.vmem [resolvable:$true] %s445_s9 }
 0x14c   : > { %s1233_s30 = scalar_lea.hbm %s1318_s4, %s1171_s25  ;;  %s1237_s18 = scalar_lea.sflag [#allocation9], %s388_s12 }
 0x14d   : > { %s840_s27 = scalar_lea.vmem %s1219_s22, 256  ;;  %s969_s11 = smov [#allocation8]  }
 0x14e   : > { %p841_p11 = scmp.ne.s32.totalorder %s1219_s22, %s840_s27  ;;  %s844_s10 = sshll.u32 %s969_s11, 4  ;;  %s845_s10 = int_to_ptr.vmem [resolvable:$false] %s844_s10 }
 0x14f   : > { %s846_s23 = scalar_lea.vmem %s845_s10, 512  ;;  %p847_p9 = scmp.lt.s32.totalorder %s1219_s22, %s845_s10 }
 0x150   : > { %p842_p0 = pnand %p841_p11, %p1093_p10  ;;  %p848_p1 = scmp.lt.s32.totalorder %s846_s23, %s840_s27 }
 0x152   : > { %p843_p5 = pneg %p842_p0  ;;  %p849_p2 = por %p848_p1, %p847_p9 }
 0x154   : > { %p850_p3 = pnand %p849_p2, %p843_p5 }
 0x1ac   : > { %v376_v10 = vpop.permute.xlu1 %375  ;;  %v368_v11 = vpop.permute.xlu0 %367 }
 0x1ad   : > { %381 = vst.msk [vmem:[%s270_s13] sm:$0xff] %vm281_vm0, %v376_v10  ;;  %373 = vst.msk [vmem:[%s263_s26] sm:$0xff] %vm281_vm0, %v368_v11 }
 0x1b9   : > { %v378_v12 = vpop.permute.xlu1 %377  ;;  %v370_v13 = vpop.permute.xlu0 %369 }
 0x1ba   : > { %382 = vst.msk [vmem:[%s270_s13 + $0x8] sm:$0xff] %vm281_vm0, %v378_v12  ;;  %374 = vst.msk [vmem:[%s263_s26 + $0x8] sm:$0xff] %vm281_vm0, %v370_v13 }
 0x1bb   : > { %853 = shalt.err (!%p850_p3)
}
 0x1bc   : > { %s854_s25 = scalar_lea.hbm %s1225_s14, 256  ;;  %s858_s13 = scalar_lea.hbm %s1317_s3, 512 }
 0x1bd   : > { %p855_p7 = scmp.ne.s32.totalorder %s1225_s14, %s854_s25  ;;  %p859_p6 = scmp.lt.u32.totalorder %s1225_s14, %s1317_s3 }
 0x1be   : > { %p860_p8 = scmp.lt.u32.totalorder %s858_s13, %s854_s25  ;;  %p862_p11 = scmp.lt.u32.totalorder %s854_s25, %s1225_s14 }
 0x1bf   : > { %p856_p13 = pnand %p855_p7, %p1093_p10 }
 0x1c0   : > { %p861_p12 = por %p860_p8, %p859_p6 }
 0x1c1   : > { %p857_p4 = pneg %p856_p13 }
 0x1c2   : > { %p863_p0 = por %p862_p11, %p861_p12 }
 0x1c4   : > { %p864_p5 = pnand %p863_p0, %p857_p4 }
 0x1c6   : > { %867 = shalt.err (!%p864_p5)
}
 0x1c7   : > { %672 = dma.vmem_to_hbm [thread:$0]  (%p1093_p10), %s1219_s22, 256, %s1225_s14, %s1237_s18, %s967_s7, %s967_s7, %s968_s6  }
 0x1c8   : > { %s868_s27 = scalar_lea.vmem %s1227_s9, 256  ;;  %s970_s11 = smov [#allocation10]  }
 0x1c9   : > { %p869_p9 = scmp.ne.s32.totalorder %s1227_s9, %s868_s27  ;;  %s872_s10 = sshll.u32 %s970_s11, 4  ;;  %s873_s10 = int_to_ptr.vmem [resolvable:$false] %s872_s10 }
 0x1ca   : > { %s874_s23 = scalar_lea.vmem %s873_s10, 512  ;;  %p875_p3 = scmp.lt.s32.totalorder %s1227_s9, %s873_s10 }
 0x1cb   : > { %p870_p1 = pnand %p869_p9, %p1093_p10  ;;  %p876_p7 = scmp.lt.s32.totalorder %s874_s23, %s868_s27 }
 0x1cd   : > { %p871_p2 = pneg %p870_p1  ;;  %p877_p13 = por %p876_p7, %p875_p3 }
 0x1cf   : > { %p878_p4 = pnand %p877_p13, %p871_p2 }
 0x1d1   : > { %881 = shalt.err (!%p878_p4)
}
 0x1d2   : > { %s882_s22 = scalar_lea.hbm %s1233_s30, 256  ;;  %s886_s26 = scalar_lea.hbm %s1318_s4, 512 }
 0x1d3   : > { %p883_p6 = scmp.ne.s32.totalorder %s1233_s30, %s882_s22  ;;  %p887_p11 = scmp.lt.u32.totalorder %s1233_s30, %s1318_s4 }
 0x1d4   : > { %p888_p0 = scmp.lt.u32.totalorder %s886_s26, %s882_s22  ;;  %p890_p9 = scmp.lt.u32.totalorder %s882_s22, %s1233_s30 }
 0x1d5   : > { %p884_p8 = pnand %p883_p6, %p1093_p10 }
 0x1d6   : > { %p889_p5 = por %p888_p0, %p887_p11 }
 0x1d7   : > { %p885_p12 = pneg %p884_p8 }
 0x1d8   : > { %p891_p1 = por %p890_p9, %p889_p5 }
 0x1da   : > { %p892_p2 = pnand %p891_p1, %p885_p12 }
 0x1dc   : > { %895 = shalt.err (!%p892_p2)
}
 0x1dd   : > { %673 = dma.vmem_to_hbm [thread:$0]  (%p1093_p10), %s1227_s9, 256, %s1233_s30, %s1237_s18, %s967_s7, %s967_s7, %s968_s6  }
 0x1de PF: > { %s460_s21 = sand.u32 1, %s938_s15   ;;  %p1335_p3 = scmp.ne.s32.totalorder %s1324_s24, 0 }
 0x1df   : > { %p1336_p7 = scmp.ge.s32.totalorder %s958_s20, 2  ;;  %s461_s5 = scalar_lea.sflag [#allocation4], %s460_s21 }
 0x1e1   : > { %p686_p13 = pnand %p1336_p7, %p1335_p3 }
 0x1e3   : > { %929 = dma.done.wait (!%p686_p13), %s461_s5, 256  }
 0x1e4   : > { %931 = vsyncadd (!%p686_p13), %s461_s5, 4294967040  ;;  %s1337_s28 = sadd.s32 4294967294, %s958_s20  }
 0x1e5   : > { %s469_s27 = sand.u32 1, %s1337_s28  }
 0x1e6   : > { %s470_s11 = scalar_lea.sflag [#allocation9], %s469_s27 }
 0x1e7   : > { %933 = dma.done.wait (!%p686_p13), %s470_s11, 512  }
 0x1e8   : > { %935 = vsyncadd (!%p686_p13), %s470_s11, 4294966784  ;;  %s25_s20 = sadd.s32 1, %s958_s20   ;;  %s1338_s15 = smov %s942_s16 }
 0x1e9   : > { %p22_p10 = scmp.ge.s32.totalorder %s25_s20, 4   ;;  %s1339_s16 = smov %s946_s17 }
 0x1ea   : > { %s1340_s17 = smov %s1102_s8  ;;  %s1341_s18 = smov %s954_s19 }
 0x1eb   : > { %s1342_s19 = smov %s1344_s29  ;;  %24 = sbr.rel (!%p22_p10) target bundleno = 9 (0x9), region = 109 }
 0x1f2   :  { %484 = vsyncpa [#allocation3], 1 }
 0x1f3   :  { %486 = vsyncpa [#allocation3 + $0x1], 1 }
 0x1f4   :  { %487 = vsyncpa [#allocation6], 1 }
 0x1f5   :  { %488 = vsyncpa [#allocation4], 1 }
 0x1f6   :  { %490 = vsyncpa [#allocation4 + $0x1], 1 }
 0x1f7   :  { %491 = vsyncpa [#allocation9], 1 }
 0x1f8   :  { %493 = vsyncpa [#allocation9 + $0x1], 1 }

</bundles_post_ra>
